<compile_context>
chip_gen: v7x
topology: tpu7x:2x2x1
jax: 0.10.0
libtpu: 0.0.40
codegen_flags: <defaults>
</compile_context>

<pallas_src>
import functools

import jax
import jax.numpy as jnp
from jax import lax
from jax.experimental import pallas as pl
from jax.experimental.pallas import tpu as pltpu


# ---------------------------------------------------------------------------
# Stand-in sizes (synthetic weights; layouts chosen for TPU lanes)
# ---------------------------------------------------------------------------
C_IN = 3              # RGB input, as EfficientNet expects
C_STEM = 32           # logical stem width
C_STEM_P = 128        # stem width padded to a full 128-lane / MXU column block
N_FEATURES = 256      # stand-in for b7's 2560 head features
K_LOGICAL = 9 * C_IN  # im2col depth for the 3x3 stem conv (= 27)
K_PAD = 32            # zero-padded K for the stem matmul


def _round_up(x, m):
    return ((x + m - 1) // m) * m


# ---------------------------------------------------------------------------
# Fused kernel. Per grid step (b, m):
#   h1 = swish((cols_tile @ Wstem) * s1 + b1)         MXU (bf16) + VPU/EUP (f32)
#   h2 = swish((h1 @ Whead)       * s2 + b2)          MXU (bf16) + VPU/EUP (f32)
#   acc += sum_rows(h2)                               XLU, VMEM-resident accumulator
# Last row tile of each batch:
#   out[b] = (acc . fc_w) / HW + fc_b                 VPU/XLU (no N=1 matmul)
# ---------------------------------------------------------------------------
def _make_fused_kernel(tile_m, hw_valid, hw_padded):
    inv_hw = 1.0 / float(hw_valid)
    needs_mask = hw_padded != hw_valid

    def kernel(cols_ref, stem_w_ref, stem_s_ref, stem_b_ref,
               head_w_ref, head_s_ref, head_b_ref,
               fc_w_ref, fc_b_ref, o_ref, acc_ref):
        m = pl.program_id(1)
        nm = pl.num_programs(1)

        @pl.when(m == 0)
        def _():
            acc_ref[...] = jnp.zeros_like(acc_ref)

        x = cols_ref[0]                                       # [tm, K_PAD] bf16

        # stem conv (im2col matmul) + folded BN + swish (f32 epilogue)
        h1 = jnp.dot(x, stem_w_ref[...], preferred_element_type=jnp.float32)
        y1 = h1 * stem_s_ref[...] + stem_b_ref[...]
        a1 = y1 * jax.nn.sigmoid(y1)                          # [tm, 128] f32

        # 1x1 feature conv + folded BN + swish (bf16 MXU operands, f32 epilogue)
        h2 = jnp.dot(a1.astype(jnp.bfloat16), head_w_ref[...],
                     preferred_element_type=jnp.float32)
        y2 = h2 * head_s_ref[...] + head_b_ref[...]
        a2 = y2 * jax.nn.sigmoid(y2)                          # [tm, 256] f32

        if needs_mask:
            rows = m * tile_m + lax.broadcasted_iota(jnp.int32, (tile_m, 1), 0)
            a2 = jnp.where(rows < hw_valid, a2, 0.0)

        # partial global-average-pool sum, accumulated in VMEM scratch
        acc_ref[...] += jnp.sum(a2, axis=0, keepdims=True)    # [1, N_FEATURES]

        @pl.when(m == nm - 1)
        def _():
            # replaced classifier: Linear(n_features, 1) on VPU/XLU
            pooled_dot = jnp.sum(acc_ref[...] * fc_w_ref[...])
            res = pooled_dot * inv_hw + fc_b_ref[0]
            o_ref[...] = jnp.full(o_ref.shape, res, dtype=o_ref.dtype)

    return kernel


# ---------------------------------------------------------------------------
# Wrapper: NCHW -> NHWC, im2col for the stem conv, fused pallas_call
# ---------------------------------------------------------------------------
@functools.partial(jax.jit, static_argnames=("tile_m",))
def model_forward(params, x_nchw, tile_m=512):
    # NCHW (PyTorch) -> NHWC; bf16 activations for MXU + halved HBM traffic
    x = jnp.transpose(x_nchw, (0, 2, 3, 1)).astype(jnp.bfloat16)
    B, H, W, C = x.shape

    # im2col for the 3x3 stride-2 pad-1 stem conv.
    # PyTorch Conv2d(k=3, s=2, p=1): out = floor((H - 1) / 2) + 1 (odd-size safe).
    # TODO(synk): at real b7 sizes this gather should move in-kernel (strided DMA
    # of the padded NHWC input) to avoid materializing the 9x cols slab in HBM.
    oh = (H - 1) // 2 + 1
    ow = (W - 1) // 2 + 1
    xp = jnp.pad(x, ((0, 0), (1, 1), (1, 1), (0, 0)))
    patches = []
    for i in range(3):
        for j in range(3):
            patches.append(xp[:, i:i + 2 * oh:2, j:j + 2 * ow:2, :])
    # tap-major (ki, kj), channel-minor ordering; synthetic weights use the same.
    cols = jnp.concatenate(patches, axis=-1).reshape(B, oh * ow, 9 * C)

    hw = oh * ow
    tm = min(int(tile_m), _round_up(hw, 16))
    tm = max(16, (tm // 16) * 16)            # bf16 sublane tile = 16
    hw_p = _round_up(hw, tm)
    cols = jnp.pad(cols, ((0, 0), (0, hw_p - hw), (0, K_PAD - 9 * C)))
    nm = hw_p // tm

    kernel = _make_fused_kernel(tm, hw, hw_p)

    out3 = pl.pallas_call(
        kernel,
        out_shape=jax.ShapeDtypeStruct((B, 8, 128), jnp.float32),
        grid=(B, nm),
        in_specs=[
            pl.BlockSpec((1, tm, K_PAD), lambda b, m: (b, m, 0)),        # cols tile
            pl.BlockSpec((K_PAD, C_STEM_P), lambda b, m: (0, 0)),        # stem_w
            pl.BlockSpec((1, C_STEM_P), lambda b, m: (0, 0)),            # stem_scale
            pl.BlockSpec((1, C_STEM_P), lambda b, m: (0, 0)),            # stem_bias
            pl.BlockSpec((C_STEM_P, N_FEATURES), lambda b, m: (0, 0)),   # head_w
            pl.BlockSpec((1, N_FEATURES), lambda b, m: (0, 0)),          # head_scale
            pl.BlockSpec((1, N_FEATURES), lambda b, m: (0, 0)),          # head_bias
            pl.BlockSpec((1, N_FEATURES), lambda b, m: (0, 0)),          # fc_w
            pl.BlockSpec(memory_space=pltpu.MemorySpace.SMEM),           # fc_b
        ],
        out_specs=pl.BlockSpec((1, 8, 128), lambda b, m: (b, 0, 0)),     # lane-dense
        scratch_shapes=[pltpu.VMEM((1, N_FEATURES), jnp.float32)],       # pool acc
        compiler_params=pltpu.CompilerParams(
            dimension_semantics=("parallel", "arbitrary")),
    )(cols, params["stem_w"], params["stem_scale"], params["stem_bias"],
      params["head_w"], params["head_scale"], params["head_bias"],
      params["fc_w"], params["fc_b"])

    # only element [b, 0, 0] of each padded block carries the Linear output
    return out3[:, 0, :1]                     # [B, 1] float32


# ---------------------------------------------------------------------------
# Deterministic synthetic parameters (padded / bf16 where they feed the MXU)
# ---------------------------------------------------------------------------
def init_params(key):
    ks = jax.random.split(key, 3)
    stem_w = jax.random.normal(ks[0], (K_LOGICAL, C_STEM), jnp.float32) * 0.1
    stem_w = jnp.pad(stem_w, ((0, K_PAD - K_LOGICAL), (0, C_STEM_P - C_STEM)))
    head_w = jax.random.normal(ks[1], (C_STEM, N_FEATURES), jnp.float32) * 0.1
    head_w = jnp.pad(head_w, ((0, C_STEM_P - C_STEM), (0, 0)))
    fc_w = jax.random.normal(ks[2], (N_FEATURES,), jnp.float32) * 0.05
    return {
        "stem_w": stem_w.astype(jnp.bfloat16),                 # [32, 128]
        "stem_scale": jnp.ones((1, C_STEM_P), jnp.float32),    # folded BN gamma/sqrt(var)
        "stem_bias": jnp.zeros((1, C_STEM_P), jnp.float32),    # folded BN beta - mean*scale
        "head_w": head_w.astype(jnp.bfloat16),                 # [128, 256]
        "head_scale": jnp.ones((1, N_FEATURES), jnp.float32),
        "head_bias": jnp.zeros((1, N_FEATURES), jnp.float32),
        "fc_w": fc_w.reshape(1, N_FEATURES),                   # Linear(n_features, 1) weight
        "fc_b": jnp.zeros((1,), jnp.float32),                  # Linear bias (SMEM scalar)
    }


if __name__ == "__main__":
    key = jax.random.PRNGKey(0)
    pkey, xkey = jax.random.split(key)
    params = init_params(pkey)
    # small image batch consistent with the module's forward (NCHW RGB image)
    x = jax.random.normal(xkey, (2, C_IN, 32, 32), jnp.float32)
    # tile_m=128 -> 2 row tiles per image, exercising the pooled accumulation path
    out = model_forward(params, x, tile_m=128)
    out = jax.block_until_ready(out)
    assert out.shape == (2, 1) and out.dtype == jnp.float32
    assert bool(jnp.all(jnp.isfinite(out)))
    print("KERNEL_OK")
</pallas_src>

<mosaic_0001>
module attributes {stable_mosaic.version = 11 : i64} {
  func.func @kernel(%arg0: i32, %arg1: i32, %arg2: memref<1x128x32xbf16, #tpu.memory_space<vmem>>, %arg3: memref<32x128xbf16, #tpu.memory_space<vmem>>, %arg4: memref<1x128xf32, #tpu.memory_space<vmem>>, %arg5: memref<1x128xf32, #tpu.memory_space<vmem>>, %arg6: memref<128x256xbf16, #tpu.memory_space<vmem>>, %arg7: memref<1x256xf32, #tpu.memory_space<vmem>>, %arg8: memref<1x256xf32, #tpu.memory_space<vmem>>, %arg9: memref<1x256xf32, #tpu.memory_space<vmem>>, %arg10: memref<1xf32, #tpu.memory_space<smem>>, %arg11: memref<1x8x128xf32, #tpu.memory_space<vmem>>, %arg12: memref<1x256xf32, #tpu.memory_space<vmem>>) attributes {dimension_semantics = [#tpu.dimension_semantics<parallel>, #tpu.dimension_semantics<arbitrary>], iteration_bounds = array<i64: 2, 2>, scalar_prefetch = 0 : i64, scratch_operands = 1 : i64, tpu.core_type = #tpu.core_type<tc>, window_params = [{transform_indices = @transform_0, window_bounds = array<i64: 1, 128, 32>}, {pipeline_mode = #tpu.pipeline_mode<synchronous>, transform_indices = @transform_1, window_bounds = array<i64: 32, 128>}, {pipeline_mode = #tpu.pipeline_mode<synchronous>, transform_indices = @transform_2, window_bounds = array<i64: 1, 128>}, {pipeline_mode = #tpu.pipeline_mode<synchronous>, transform_indices = @transform_3, window_bounds = array<i64: 1, 128>}, {pipeline_mode = #tpu.pipeline_mode<synchronous>, transform_indices = @transform_4, window_bounds = array<i64: 128, 256>}, {pipeline_mode = #tpu.pipeline_mode<synchronous>, transform_indices = @transform_5, window_bounds = array<i64: 1, 256>}, {pipeline_mode = #tpu.pipeline_mode<synchronous>, transform_indices = @transform_6, window_bounds = array<i64: 1, 256>}, {pipeline_mode = #tpu.pipeline_mode<synchronous>, transform_indices = @transform_7, window_bounds = array<i64: 1, 256>}, {transform_indices = @transform_8, window_bounds = array<i64: 1>}, {transform_indices = @transform_9, window_bounds = array<i64: 1, 8, 128>}]} {
    %c0_i32 = arith.constant 0 : i32
    %0 = arith.cmpi eq, %arg1, %c0_i32 : i32
    %1 = arith.extui %0 : i1 to i32
    %c0_i32_0 = arith.constant 0 : i32
    %2 = arith.cmpi ne, %1, %c0_i32_0 : i32
    scf.if %2 {
      %cst_24 = arith.constant 0.000000e+00 : f32
      %42 = vector.broadcast %cst_24 : f32 to vector<1x256xf32>
      %c0_25 = arith.constant 0 : index
      %c0_26 = arith.constant 0 : index
      %43 = vector.load %arg12[%c0_25, %c0_26] : memref<1x256xf32, #tpu.memory_space<vmem>>, vector<1x256xf32>
      tpu.vector_store %arg12[%c0_25, %c0_26], %42 {strides = array<i32>} : memref<1x256xf32, #tpu.memory_space<vmem>>, vector<1x256xf32>,
    } else {
    }
    %c0 = arith.constant 0 : index
    %c0_1 = arith.constant 0 : index
    %c0_2 = arith.constant 0 : index
    %3 = vector.load %arg2[%c0, %c0_1, %c0_2] : memref<1x128x32xbf16, #tpu.memory_space<vmem>>, vector<1x128x32xbf16>
    %4 = vector.shape_cast %3 : vector<1x128x32xbf16> to vector<128x32xbf16>
    %c0_3 = arith.constant 0 : index
    %c0_4 = arith.constant 0 : index
    %5 = vector.load %arg3[%c0_3, %c0_4] : memref<32x128xbf16, #tpu.memory_space<vmem>>, vector<32x128xbf16>
    %cst = arith.constant dense<0.000000e+00> : vector<128x128xf32>
    %6 = tpu.matmul %4, %5, %cst {dimension_numbers = #tpu.dot_dimension_numbers<[1], [0], [0], [1], [0, 0, 1, 1], [], []>} : vector<128x32xbf16>, vector<32x128xbf16>, vector<128x128xf32> -> vector<128x128xf32>
    %c0_5 = arith.constant 0 : index
    %c0_6 = arith.constant 0 : index
    %7 = vector.load %arg4[%c0_5, %c0_6] : memref<1x128xf32, #tpu.memory_space<vmem>>, vector<1x128xf32>
    %8 = vector.broadcast %7 : vector<1x128xf32> to vector<128x128xf32>
    %9 = arith.mulf %6, %8 : vector<128x128xf32>
    %c0_7 = arith.constant 0 : index
    %c0_8 = arith.constant 0 : index
    %10 = vector.load %arg5[%c0_7, %c0_8] : memref<1x128xf32, #tpu.memory_space<vmem>>, vector<1x128xf32>
    %11 = vector.broadcast %10 : vector<1x128xf32> to vector<128x128xf32>
    %12 = arith.addf %9, %11 : vector<128x128xf32>
    %13 = arith.negf %12 : vector<128x128xf32>
    %14 = math.exp %13 : vector<128x128xf32>
    %cst_9 = arith.constant 1.000000e+00 : f32
    %15 = vector.broadcast %cst_9 : f32 to vector<128x128xf32>
    %16 = arith.addf %15, %14 : vector<128x128xf32>
    %17 = arith.divf %15, %16 : vector<128x128xf32>
    %18 = arith.mulf %12, %17 : vector<128x128xf32>
    %19 = arith.truncf %18 : vector<128x128xf32> to vector<128x128xbf16>
    %c0_10 = arith.constant 0 : index
    %c0_11 = arith.constant 0 : index
    %20 = vector.load %arg6[%c0_10, %c0_11] : memref<128x256xbf16, #tpu.memory_space<vmem>>, vector<128x256xbf16>
    %cst_12 = arith.constant dense<0.000000e+00> : vector<128x256xf32>
    %21 = tpu.matmul %19, %20, %cst_12 {dimension_numbers = #tpu.dot_dimension_numbers<[1], [0], [0], [1], [0, 0, 1, 1], [], []>} : vector<128x128xbf16>, vector<128x256xbf16>, vector<128x256xf32> -> vector<128x256xf32>
    %c0_13 = arith.constant 0 : index
    %c0_14 = arith.constant 0 : index
    %22 = vector.load %arg7[%c0_13, %c0_14] : memref<1x256xf32, #tpu.memory_space<vmem>>, vector<1x256xf32>
    %23 = vector.broadcast %22 : vector<1x256xf32> to vector<128x256xf32>
    %24 = arith.mulf %21, %23 : vector<128x256xf32>
    %c0_15 = arith.constant 0 : index
    %c0_16 = arith.constant 0 : index
    %25 = vector.load %arg8[%c0_15, %c0_16] : memref<1x256xf32, #tpu.memory_space<vmem>>, vector<1x256xf32>
    %26 = vector.broadcast %25 : vector<1x256xf32> to vector<128x256xf32>
    %27 = arith.addf %24, %26 : vector<128x256xf32>
    %28 = arith.negf %27 : vector<128x256xf32>
    %29 = math.exp %28 : vector<128x256xf32>
    %cst_17 = arith.constant 1.000000e+00 : f32
    %30 = vector.broadcast %cst_17 : f32 to vector<128x256xf32>
    %31 = arith.addf %30, %29 : vector<128x256xf32>
    %32 = arith.divf %30, %31 : vector<128x256xf32>
    %33 = arith.mulf %27, %32 : vector<128x256xf32>
    %c0_18 = arith.constant 0 : index
    %c0_19 = arith.constant 0 : index
    %34 = vector.load %arg12[%c0_18, %c0_19] : memref<1x256xf32, #tpu.memory_space<vmem>>, vector<1x256xf32>
    %cst_20 = arith.constant dense<0.000000e+00> : vector<256xf32>
    %35 = vector.multi_reduction <add>, %33, %cst_20 [0] : vector<128x256xf32> to vector<256xf32>
    %36 = vector.shape_cast %35 : vector<256xf32> to vector<1x256xf32>
    %37 = arith.addf %34, %36 : vector<1x256xf32>
    %c0_21 = arith.constant 0 : index
    %c0_22 = arith.constant 0 : index
    %38 = vector.load %arg12[%c0_21, %c0_22] : memref<1x256xf32, #tpu.memory_space<vmem>>, vector<1x256xf32>
    tpu.vector_store %arg12[%c0_21, %c0_22], %37 {strides = array<i32>} : memref<1x256xf32, #tpu.memory_space<vmem>>, vector<1x256xf32>,
    %c1_i32 = arith.constant 1 : i32
    %39 = arith.cmpi eq, %arg1, %c1_i32 : i32
    %40 = arith.extui %39 : i1 to i32
    %c0_i32_23 = arith.constant 0 : i32
    %41 = arith.cmpi ne, %40, %c0_i32_23 : i32
    scf.if %41 {
      %c0_24 = arith.constant 0 : index
      %c0_25 = arith.constant 0 : index
      %42 = vector.load %arg12[%c0_24, %c0_25] : memref<1x256xf32, #tpu.memory_space<vmem>>, vector<1x256xf32>
      %c0_26 = arith.constant 0 : index
      %c0_27 = arith.constant 0 : index
      %43 = vector.load %arg9[%c0_26, %c0_27] : memref<1x256xf32, #tpu.memory_space<vmem>>, vector<1x256xf32>
      %44 = arith.mulf %42, %43 : vector<1x256xf32>
      %45 = vector.shape_cast %44 : vector<1x256xf32> to vector<1x1x256xf32>
      %cst_28 = arith.constant dense<0.000000e+00> : vector<1xf32>
      %46 = vector.multi_reduction <add>, %45, %cst_28 [1, 2] : vector<1x1x256xf32> to vector<1xf32>
      %47 = vector.shape_cast %46 : vector<1xf32> to vector<1x1x1xf32>
      %48 = vector.extract %47[0, 0, 0] : f32 from vector<1x1x1xf32>
      %cst_29 = arith.constant 3.906250e-03 : f32
      %49 = arith.mulf %48, %cst_29 : f32
      %c0_30 = arith.constant 0 : index
      %50 = memref.load %arg10[%c0_30] : memref<1xf32, #tpu.memory_space<smem>>
      %51 = arith.addf %49, %50 : f32
      %52 = vector.broadcast %51 : f32 to vector<1x8x128xf32>
      %c0_31 = arith.constant 0 : index
      %c0_32 = arith.constant 0 : index
      %c0_33 = arith.constant 0 : index
      %53 = vector.load %arg11[%c0_31, %c0_32, %c0_33] : memref<1x8x128xf32, #tpu.memory_space<vmem>>, vector<1x8x128xf32>
      tpu.vector_store %arg11[%c0_31, %c0_32, %c0_33], %52 {strides = array<i32>} : memref<1x8x128xf32, #tpu.memory_space<vmem>>, vector<1x8x128xf32>,
    } else {
    }
    return
  }
  func.func @transform_0(%arg0: i32, %arg1: i32) -> (i32, i32, i32) {
    %c0_i32 = arith.constant 0 : i32
    %c0_i32_0 = arith.constant 0 : i32
    return %arg0, %arg1, %c0_i32 : i32, i32, i32
  }
  func.func @transform_1(%arg0: i32, %arg1: i32) -> (i32, i32) {
    %c0_i32 = arith.constant 0 : i32
    %c0_i32_0 = arith.constant 0 : i32
    %c0_i32_1 = arith.constant 0 : i32
    return %c0_i32, %c0_i32_0 : i32, i32
  }
  func.func @transform_2(%arg0: i32, %arg1: i32) -> (i32, i32) {
    %c0_i32 = arith.constant 0 : i32
    %c0_i32_0 = arith.constant 0 : i32
    %c0_i32_1 = arith.constant 0 : i32
    return %c0_i32, %c0_i32_0 : i32, i32
  }
  func.func @transform_3(%arg0: i32, %arg1: i32) -> (i32, i32) {
    %c0_i32 = arith.constant 0 : i32
    %c0_i32_0 = arith.constant 0 : i32
    %c0_i32_1 = arith.constant 0 : i32
    return %c0_i32, %c0_i32_0 : i32, i32
  }
  func.func @transform_4(%arg0: i32, %arg1: i32) -> (i32, i32) {
    %c0_i32 = arith.constant 0 : i32
    %c0_i32_0 = arith.constant 0 : i32
    %c0_i32_1 = arith.constant 0 : i32
    return %c0_i32, %c0_i32_0 : i32, i32
  }
  func.func @transform_5(%arg0: i32, %arg1: i32) -> (i32, i32) {
    %c0_i32 = arith.constant 0 : i32
    %c0_i32_0 = arith.constant 0 : i32
    %c0_i32_1 = arith.constant 0 : i32
    return %c0_i32, %c0_i32_0 : i32, i32
  }
  func.func @transform_6(%arg0: i32, %arg1: i32) -> (i32, i32) {
    %c0_i32 = arith.constant 0 : i32
    %c0_i32_0 = arith.constant 0 : i32
    %c0_i32_1 = arith.constant 0 : i32
    return %c0_i32, %c0_i32_0 : i32, i32
  }
  func.func @transform_7(%arg0: i32, %arg1: i32) -> (i32, i32) {
    %c0_i32 = arith.constant 0 : i32
    %c0_i32_0 = arith.constant 0 : i32
    %c0_i32_1 = arith.constant 0 : i32
    return %c0_i32, %c0_i32_0 : i32, i32
  }
  func.func @transform_8(%arg0: i32, %arg1: i32) -> i32 {
    %c0_i32 = arith.constant 0 : i32
    %c0_i32_0 = arith.constant 0 : i32
    return %c0_i32 : i32
  }
  func.func @transform_9(%arg0: i32, %arg1: i32) -> (i32, i32, i32) {
    %c0_i32 = arith.constant 0 : i32
    %c0_i32_0 = arith.constant 0 : i32
    %c0_i32_1 = arith.constant 0 : i32
    return %arg0, %c0_i32, %c0_i32_0 : i32, i32, i32
  }
}

</mosaic_0001>

<bundles_post_ra>
// kernel: model_forward.1
= control target key start
LH: loop header
LB: loop body
LE: loop exit
PB: predicated region body
PF: predicated region fallthrough
CT: control target
= control target key end

     0   :  { %s1934_s11 = smov 0   ;;  %s1936_s12 = smov 0   ;;  %s2407_s0 = inlined_call_operand.vmem [shape: bf16[2,256,32], index: 0, kind: input, shape index: {}]   ;;  %s2408_s1 = inlined_call_operand.vmem [shape: bf16[32,128], index: 1, kind: input, shape index: {}]   ;;  %s2409_s2 = inlined_call_operand.vmem [shape: f32[1,128], index: 2, kind: input, shape index: {}]   ;;  %s2410_s3 = inlined_call_operand.vmem [shape: f32[1,128], index: 3, kind: input, shape index: {}]   ;;  %s2411_s4 = inlined_call_operand.vmem [shape: bf16[128,256], index: 4, kind: input, shape index: {}]   ;;  %s2412_s5 = inlined_call_operand.vmem [shape: f32[1,256], index: 5, kind: input, shape index: {}]   ;;  %s2413_s6 = inlined_call_operand.vmem [shape: f32[1,256], index: 6, kind: input, shape index: {}]   ;;  %s2414_s7 = inlined_call_operand.vmem [shape: f32[1,256], index: 7, kind: input, shape index: {}]   ;;  %s2415_s8 = inlined_call_operand.<no memory space> [shape: f32[1], index: 8, kind: input, shape index: {}]   ;;  %s2416_s9 = inlined_call_operand.vmem [shape: f32[2,8,128], index: 9, kind: output, shape index: {}]  }
   0x1   :  { %14 = sst [smem:[#allocation3]] %s2415_s8  ;;  %s1938_s13 = smov 0  }
   0x2   :  { %s1940_s14 = smov 0   ;;  %s1942_s15 = smov 0  }
   0x3 LB: > { %s29_s8 = sadd.s32 1, %s1868_s13  ;;  %s32_s16 = sadd.s32 1, %s1872_s14  ;;  %s1876_s15 = sphi %s1942_s15, %s20_s15   ;;  %s1872_s14 = sphi %s1940_s14, %s2420_s14   ;;  %s1868_s13 = sphi %s1938_s13, %s2419_s13   ;;  %s1864_s12 = sphi %s1936_s12, %s2418_s12   ;;  %s1860_s11 = sphi %s1934_s11, %s2417_s11  }
   0x4   : > { %p30_p0 = scmp.ge.s32.totalorder %s29_s8, 2  ;;  %p1428_p1 = scmp.ge.s32.totalorder %s1876_s15, 1 }
   0x5   : > { %p307_p2 = scmp.lt.s32.totalorder %s1876_s15, 5 }
   0x6   : > { %s2422_s8 = smov (%p30_p0, %s29_s8), 0  ;;  %s2424_s16 = smov (!%p30_p0, %s32_s16), %s1872_s14 }
   0x7   : > { %p308_p3 = pnand %p1428_p1, %p307_p2  ;;  %p34_p4 = scmp.ge.s32.totalorder %s2424_s16, 2 }
   0x8   : > { %s1429_s17 = sshll.u32 (!%p308_p3), %s1860_s11, 4  ;;  %p347_p5 = scmp.lt.s32.totalorder (!%p308_p3), %s1864_s12, 1 }
   0x9   : > { %s2426_s16 = smov (%p34_p4, %s2424_s16), 0  ;;  %311 = sbr.rel (%p308_p3) target bundleno = 836 (0x344), region = 56 }
   0xa   : > { %p349_p6 = scmp.lt.s32.totalorder (!%p308_p3), %s1429_s17, 31  ;;  %p1433_p7 = scmp.ne.s32.totalorder (!%p308_p3), %s1860_s11, 0 }
  0x10   : > { %s2428_s12 = smov (!%p347_p5, %s1864_s12), 1  ;;  %s2430_s17 = smov (!%p349_p6, %s1429_s17), 31 }
  0x11   : > { %s1430_s18 = sshll.u32 %s2428_s12, 5  ;;  %s1432_s19 = sshll.u32 %s2428_s12, 3  ;;  %v365_v0 = vlaneseq (!%p1433_p7)  ;;  %v1878_v1 = vmov (!%p1433_p7), 0.0  }
  0x12   : > { %s352_s20 = sadd.s32 %s1430_s18, %s2430_s17  ;;  %s1970_s23 = scalar_lea.vmem %s2416_s9, %s1432_s19 }
  0x13   : > { %s1431_s24 = sshll.u32 %s352_s20, 2  ;;  %364 = sbr.rel (%p1433_p7) target bundleno = 26 (0x1a), region = 60  ;;  %vm367_vm0 = vcmp.lt.s32.totalorder (!%p1433_p7), %v365_v0, 256 }
  0x14   : > { %s354_s27 = scalar_lea.vmem %s2407_s0, %s1431_s24  ;;  %369 = vst.msk [vmem:[#allocation2] sm:$0x3] (!%p1433_p7), %vm367_vm0, %v1878_v1 }
  0x1a PF: > { %v1612_v2 = vld [vmem:[%s2408_s1] sm:$0xff]   ;;  %v1613_v3 = vld [vmem:[%s2408_s1 + $0x8] sm:$0xff]   ;;  %vm442_vm1 = vcmask 261120   ;;  %v1616_v6 = vld [vmem:[%s354_s27 + $0x10] sm:$0xff]   ;;  %v1879_v28 = vmov 0   ;;  %p1518_p8 = scmp.ne.s32.totalorder %s1860_s11, 1 }
  0x1b   : > { %1531 = vmatprep.subr.bf16.mxu0 %v1612_v2  ;;  %v1614_v4 = vld [vmem:[%s354_s27] sm:$0xff]   ;;  %v1615_v5 = vld [vmem:[%s354_s27 + $0x8] sm:$0xff]   ;;  %v1617_v7 = vld [vmem:[%s354_s27 + $0x18] sm:$0xff]   ;;  %888 = vmatprep.mubr.bf16.mxu1 %v1879_v28  ;;  %vm1336_vm3 = vcmask (!%p1518_p8), 1040384   ;;  %s1350_s11 = sld [smem:[#allocation3]] (!%p1518_p8) }
  0x1c   : > { %1532 = vmatpush3.bf16.msra.mxu0 %v1612_v2  ;;  %1535 = vmatprep.mubr.msk.bf16.mxu0 %vm442_vm1, %v1614_v4  ;;  %v1618_v8 = vld [vmem:[%s354_s27 + $0x20] sm:$0xff]   ;;  %v1619_v9 = vld [vmem:[%s354_s27 + $0x28] sm:$0xff]   ;;  %v1620_v10 = vld [vmem:[%s354_s27 + $0x30] sm:$0xff]  }
  0x1d   : > { %1533 = vmatprep.subr.bf16.mxu0 %v1613_v3  ;;  %v1621_v11 = vld [vmem:[%s354_s27 + $0x38] sm:$0xff]   ;;  %v1624_v12 = vld [vmem:[%s2411_s4 + $0x4] ss:$8 sps:$4 sm:$0xff]   ;;  %v1622_v13 = vld [vmem:[%s2411_s4] ss:$8 sps:$4 sm:$0xff]  }
  0x1e   : > { %1551 = vmatprep.subr.bf16.mxu1 %v1624_v12  ;;  %v1627_v14 = vld [vmem:[%s2411_s4 + $0x14] ss:$8 sps:$4 sm:$0xff]   ;;  %v1625_v15 = vld [vmem:[%s2411_s4 + $0x10] ss:$8 sps:$4 sm:$0xff]   ;;  %v1630_v16 = vld [vmem:[%s2411_s4 + $0x24] ss:$8 sps:$4 sm:$0xff]  }
  0x1f   : > { %1559 = vmatpush1.bf16.msra.mxu1 %v1622_v13  ;;  %v1628_v17 = vld [vmem:[%s2411_s4 + $0x20] ss:$8 sps:$4 sm:$0xff]   ;;  %v1633_v18 = vld [vmem:[%s2411_s4 + $0x34] ss:$8 sps:$4 sm:$0xff]   ;;  %v1631_v19 = vld [vmem:[%s2411_s4 + $0x30] ss:$8 sps:$4 sm:$0xff]  }
  0x20   : > { %1534 = vmatpush3.bf16.msra.mxu0 %v1613_v3  ;;  %1552 = vmatprep.subr.bf16.mxu1 %v1627_v14  ;;  %v1636_v20 = vld [vmem:[%s2411_s4 + $0x44] ss:$8 sps:$4 sm:$0xff]   ;;  %v1634_v21 = vld [vmem:[%s2411_s4 + $0x40] ss:$8 sps:$4 sm:$0xff]   ;;  %v1639_v22 = vld [vmem:[%s2411_s4 + $0x54] ss:$8 sps:$4 sm:$0xff]  }
  0x21   : > { %826 = vmatprep.subr.bf16.mxu0 %v1624_v12  ;;  %v1637_v23 = vld [vmem:[%s2411_s4 + $0x50] ss:$8 sps:$4 sm:$0xff]   ;;  %v1642_v24 = vld [vmem:[%s2411_s4 + $0x64] ss:$8 sps:$4 sm:$0xff]   ;;  %v1640_v25 = vld [vmem:[%s2411_s4 + $0x60] ss:$8 sps:$4 sm:$0xff]  }
  0x22   : > { %v1645_v26 = vld [vmem:[%s2411_s4 + $0x74] ss:$8 sps:$4 sm:$0xff]   ;;  %v1643_v27 = vld [vmem:[%s2411_s4 + $0x70] ss:$8 sps:$4 sm:$0xff]   ;;  %v2043_v29 = vld [vmem:[%s2409_s2] ss:$0 sm:$0xff] }
  0x23   : > { %1536 = vmatmul.mubr.msk.bf16.vlgmr.msra.gmra.mrb[0].mxu0 %vm442_vm1, %v1615_v5  ;;  %1560 = vmatpush1.bf16.msra.mxu1 %v1625_v15  ;;  %v2048_v31 = vld [vmem:[%s2410_s3] ss:$0 sm:$0xff] }
  0x24   : > { %1539 = vmatprep.mubr.msk.bf16.mxu0 %vm442_vm1, %v1616_v6  ;;  %827 = vmatpush1.bf16.msra.mxu0 %v1622_v13 }
  0x25   : > { %828 = vmatprep.subr.bf16.mxu0 %v1627_v14  ;;  %1553 = vmatprep.subr.bf16.mxu1 %v1630_v16 }
  0x27   : > { %1561 = vmatpush1.bf16.msra.mxu1 %v1628_v17 }
  0x28   : > { %829 = vmatpush1.bf16.msra.mxu0 %v1625_v15  ;;  %1554 = vmatprep.subr.bf16.mxu1 %v1633_v18 }
  0x29   : > { %830 = vmatprep.subr.bf16.mxu0 %v1630_v16 }
  0x2b   : > { %1540 = vmatmul.mubr.msk.bf16.gmra.mrb[4].mxu0 %vm442_vm1, %v1617_v7  ;;  %1562 = vmatpush1.bf16.msra.mxu1 %v1631_v19 }
  0x2c   : > { %1543 = vmatprep.mubr.msk.bf16.mxu0 %vm442_vm1, %v1618_v8  ;;  %831 = vmatpush1.bf16.msra.mxu0 %v1628_v17 }
  0x2d   : > { %832 = vmatprep.subr.bf16.mxu0 %v1633_v18  ;;  %1555 = vmatprep.subr.bf16.mxu1 %v1636_v20 }
  0x2f   : > { %1563 = vmatpush1.bf16.msra.mxu1 %v1634_v21 }
  0x30   : > { %833 = vmatpush1.bf16.msra.mxu0 %v1631_v19  ;;  %1556 = vmatprep.subr.bf16.mxu1 %v1639_v22 }
  0x31   : > { %834 = vmatprep.subr.bf16.mxu0 %v1636_v20 }
  0x33   : > { %1544 = vmatmul.mubr.msk.bf16.gmra.mrb[8].mxu0 %vm442_vm1, %v1619_v9  ;;  %1564 = vmatpush1.bf16.msra.mxu1 %v1637_v23 }
  0x34   : > { %1547 = vmatprep.mubr.msk.bf16.mxu0 %vm442_vm1, %v1620_v10  ;;  %835 = vmatpush1.bf16.msra.mxu0 %v1634_v21 }
  0x35   : > { %836 = vmatprep.subr.bf16.mxu0 %v1639_v22  ;;  %1557 = vmatprep.subr.bf16.mxu1 %v1642_v24 }
  0x37   : > { %1565 = vmatpush1.bf16.msra.mxu1 %v1640_v25 }
  0x38   : > { %837 = vmatpush1.bf16.msra.mxu0 %v1637_v23  ;;  %1558 = vmatprep.subr.bf16.mxu1 %v1645_v26 }
  0x39   : > { %838 = vmatprep.subr.bf16.mxu0 %v1642_v24 }
  0x3b   : > { %1548 = vmatmul.mubr.msk.bf16.gmra.mrb[12].mxu0 %vm442_vm1, %v1621_v11  ;;  %1566 = vmatpush1.bf16.msra.mxu1 %v1643_v27 }
  0x3c   : > { %839 = vmatpush1.bf16.msra.mxu0 %v1640_v25  ;;  %858 = vmatprep.mubr.bf16.mxu0 %v1879_v28 }
  0x3d   : > { %840 = vmatprep.subr.bf16.mxu0 %v1645_v26 }
  0x40   : > { %841 = vmatpush1.bf16.msra.mxu0 %v1643_v27 }
  0xf6   : > { %v1537_v30 = vpop.f32.mrb[0].mxu0 }
  0xf7   : > { %v573_v32 = vmul.f32 %v1537_v30, %v2043_v29  ;;  %v501_v33 = vpop.f32.mrb[1].mxu0 }
  0xf8   : > { %v571_v34 = vmul.f32 %v2043_v29, %v501_v33  ;;  %v1538_v35 = vpop.f32.mrb[2].mxu0 }
  0xf9   : > { %v2053_v36 = vadd.f32 %v2048_v31, %v573_v32  ;;  %v574_v37 = vmul.f32 %v1538_v35, %v2043_v29  ;;  %v504_v38 = vpop.f32.mrb[3].mxu0 }
  0xfa   : > { %v2057_v39 = vadd.f32 %v2048_v31, %v571_v34  ;;  %v572_v40 = vmul.f32 %v2043_v29, %v504_v38 }
  0xfb   : > { %v1456_v41 = vmul.f32 -1.442695, %v2053_v36  ;;  %v2062_v42 = vadd.f32 %v2048_v31, %v574_v37 }
  0xfc   : > { %v1454_v43 = vmul.f32 -1.442695, %v2057_v39  ;;  %v2066_v44 = vadd.f32 %v2048_v31, %v572_v40 }
  0xfd   : > { %1646 = vpow2.f32 %v1456_v41  ;;  %v1457_v45 = vmul.f32 -1.442695, %v2062_v42 }
  0xfe   : > { %1648 = vpow2.f32 %v1454_v43  ;;  %v1455_v46 = vmul.f32 -1.442695, %v2066_v44  ;;  %v1541_v47 = vpop.f32.mrb[4].mxu0 }
  0xff   : > { %1650 = vpow2.f32 %v1457_v45  ;;  %v577_v48 = vmul.f32 %v1541_v47, %v2043_v29  ;;  %v517_v49 = vpop.f32.mrb[5].mxu0 }
 0x100   : > { %1652 = vpow2.f32 %v1455_v46  ;;  %v575_v50 = vmul.f32 %v2043_v29, %v517_v49  ;;  %v1542_v51 = vpop.f32.mrb[6].mxu0 }
 0x101   : > { %v2073_v52 = vadd.f32 %v2048_v31, %v577_v48  ;;  %v578_v53 = vmul.f32 %v1542_v51, %v2043_v29  ;;  %v520_v54 = vpop.f32.mrb[7].mxu0 }
 0x102   : > { %v2077_v55 = vadd.f32 %v2048_v31, %v575_v50  ;;  %v576_v56 = vmul.f32 %v2043_v29, %v520_v54 }
 0x103   : > { %v1460_v57 = vmul.f32 -1.442695, %v2073_v52  ;;  %v2082_v58 = vadd.f32 %v2048_v31, %v578_v53 }
 0x104   : > { %v1458_v59 = vmul.f32 -1.442695, %v2077_v55  ;;  %v2086_v60 = vadd.f32 %v2048_v31, %v576_v56 }
 0x105   : > { %1654 = vpow2.f32 %v1460_v57  ;;  %v1461_v61 = vmul.f32 -1.442695, %v2082_v58 }
 0x106   : > { %1656 = vpow2.f32 %v1458_v59  ;;  %v1459_v62 = vmul.f32 -1.442695, %v2086_v60  ;;  %v1545_v63 = vpop.f32.mrb[8].mxu0 }
 0x107   : > { %v1647_v0 = vpop.eup %1646  ;;  %1658 = vpow2.f32 %v1461_v61  ;;  %v581_v1 = vmul.f32 %v1545_v63, %v2043_v29  ;;  %v533_v2 = vpop.f32.mrb[9].mxu0 }
 0x108   : > { %v1649_v3 = vpop.eup %1648  ;;  %v660_v4 = vadd.f32 1.0, %v1647_v0  ;;  %1660 = vpow2.f32 %v1459_v62  ;;  %v579_v5 = vmul.f32 %v2043_v29, %v533_v2  ;;  %v1546_v6 = vpop.f32.mrb[10].mxu0 }
 0x109   : > { %v1651_v7 = vpop.eup %1650  ;;  %v658_v8 = vadd.f32 1.0, %v1649_v3  ;;  %v2093_v9 = vadd.f32 %v2048_v31, %v581_v1  ;;  %v582_v10 = vmul.f32 %v1546_v6, %v2043_v29  ;;  %v536_v11 = vpop.f32.mrb[11].mxu0 }
 0x10a   : > { %v1653_v12 = vpop.eup %1652  ;;  %1662 = vrcp.f32 %v660_v4  ;;  %v661_v13 = vadd.f32 1.0, %v1651_v7  ;;  %v2097_v14 = vadd.f32 %v2048_v31, %v579_v5  ;;  %v580_v15 = vmul.f32 %v2043_v29, %v536_v11 }
 0x10b   : > { %1664 = vrcp.f32 %v658_v8  ;;  %v659_v16 = vadd.f32 1.0, %v1653_v12  ;;  %v1464_v17 = vmul.f32 -1.442695, %v2093_v9  ;;  %v2102_v18 = vadd.f32 %v2048_v31, %v582_v10 }
 0x10c   : > { %1666 = vrcp.f32 %v661_v13  ;;  %v1462_v19 = vmul.f32 -1.442695, %v2097_v14  ;;  %v2106_v20 = vadd.f32 %v2048_v31, %v580_v15 }
 0x10d   : > { %1668 = vrcp.f32 %v659_v16  ;;  %v1465_v21 = vmul.f32 -1.442695, %v2102_v18 }
 0x10e   : > { %1670 = vpow2.f32 %v1464_v17  ;;  %v1463_v22 = vmul.f32 -1.442695, %v2106_v20  ;;  %v1549_v23 = vpop.f32.mrb[12].mxu0 }
 0x10f   : > { %v1655_v24 = vpop.eup %1654  ;;  %1672 = vpow2.f32 %v1462_v19  ;;  %v585_v25 = vmul.f32 %v1549_v23, %v2043_v29  ;;  %v549_v26 = vpop.f32.mrb[13].mxu0 }
 0x110   : > { %v1657_v27 = vpop.eup %1656  ;;  %v664_v30 = vadd.f32 1.0, %v1655_v24  ;;  %1674 = vpow2.f32 %v1465_v21  ;;  %v583_v32 = vmul.f32 %v2043_v29, %v549_v26  ;;  %v1550_v33 = vpop.f32.mrb[14].mxu0 }
 0x111   : > { %v1659_v34 = vpop.eup %1658  ;;  %v662_v35 = vadd.f32 1.0, %v1657_v27  ;;  %1676 = vpow2.f32 %v1463_v22  ;;  %v2113_v37 = vadd.f32 %v2048_v31, %v585_v25  ;;  %v586_v38 = vmul.f32 %v1550_v33, %v2043_v29  ;;  %v552_v40 = vpop.f32.mrb[15].mxu0 }
 0x112   : > { %v1661_v41 = vpop.eup %1660  ;;  %1678 = vrcp.f32 %v664_v30  ;;  %v665_v43 = vadd.f32 1.0, %v1659_v34  ;;  %v2117_v45 = vadd.f32 %v2048_v31, %v583_v32  ;;  %v584_v46 = vmul.f32 %v2043_v29, %v552_v40 }
 0x113   : > { %1680 = vrcp.f32 %v662_v35  ;;  %v663_v47 = vadd.f32 1.0, %v1661_v41  ;;  %v1468_v48 = vmul.f32 -1.442695, %v2113_v37  ;;  %v2122_v49 = vadd.f32 %v2048_v31, %v586_v38 }
 0x114   : > { %v1663_v50 = vpop.eup %1662  ;;  %1682 = vrcp.f32 %v665_v43  ;;  %v1466_v51 = vmul.f32 -1.442695, %v2117_v45  ;;  %v2126_v53 = vadd.f32 %v2048_v31, %v584_v46 }
 0x115   : > { %v1665_v54 = vpop.eup %1664  ;;  %1684 = vrcp.f32 %v663_v47  ;;  %v1469_v56 = vmul.f32 -1.442695, %v2122_v49  ;;  %v708_v61 = vmul.f32 %v1663_v50, %v2053_v36  ;;  %v941_v50 = vlaneseq }
 0x116   : > { %v1667_v57 = vpop.eup %1666  ;;  %1686 = vpow2.f32 %v1468_v48  ;;  %v1467_v29 = vmul.f32 -1.442695, %v2126_v53  ;;  %v706_v0 = vmul.f32 %v1665_v54, %v2057_v39 }
 0x117   : > { %v1669_v59 = vpop.eup %1668  ;;  %v709_v62 = vmul.f32 %v1667_v57, %v2062_v42  ;;  %1688 = vpow2.f32 %v1466_v51  ;;  %v2153_v51 = vshrl.u32 %v941_v50, 7  ;;  %vm1315_vm2 = vcmp.lt.s32.totalorder %v941_v50, 256 }
 0x118   : > { %v1671_v63 = vpop.eup %1670  ;;  %v707_v31 = vmul.f32 %v1669_v59, %v2066_v44  ;;  %1690 = vpow2.f32 %v1469_v56 }
 0x119   : > { %v1673_v1 = vpop.eup %1672  ;;  %v668_v2 = vadd.f32 1.0, %v1671_v63  ;;  %1692 = vpow2.f32 %v1467_v29  ;;  %v723_v3 = vpack.c.bf16 %v709_v62, %v708_v61 }
 0x11a   : > { %v1675_v4 = vpop.eup %1674  ;;  %v722_v5 = vpack.c.bf16 %v707_v31, %v706_v0  ;;  %v666_v6 = vadd.f32 1.0, %v1673_v1 }
 0x11b   : > { %v1677_v7 = vpop.eup %1676  ;;  %1694 = vrcp.f32 %v668_v2  ;;  %v669_v8 = vadd.f32 1.0, %v1675_v4 }
 0x11c   : > { %v1679_v36 = vpop.eup %1678  ;;  %1696 = vrcp.f32 %v666_v6  ;;  %v667_v42 = vadd.f32 1.0, %v1677_v7  ;;  %859 = vmatmul.mubr.bf16.vlgmr.msra.gmra.mrb[16].mxu0 %v722_v5 }
 0x11d   : > { %v1681_v10 = vpop.eup %1680  ;;  %1698 = vrcp.f32 %v669_v8  ;;  %868 = vmatprep.mubr.bf16.mxu0 %v1879_v28  ;;  %v712_v11 = vmul.f32 %v1679_v36, %v2073_v52 }
 0x11e   : > { %v1683_v39 = vpop.eup %1682  ;;  %1700 = vrcp.f32 %v667_v42  ;;  %v710_v15 = vmul.f32 %v1681_v10, %v2077_v55 }
 0x11f   : > { %v1685_v44 = vpop.eup %1684  ;;  %v713_v12 = vmul.f32 %v1683_v39, %v2082_v58 }
 0x120   : > { %v1687_v13 = vpop.eup %1686  ;;  %v711_v16 = vmul.f32 %v1685_v44, %v2086_v60 }
 0x121   : > { %v1689_v17 = vpop.eup %1688  ;;  %v672_v19 = vadd.f32 1.0, %v1687_v13  ;;  %v725_v21 = vpack.c.bf16 %v713_v12, %v712_v11 }
 0x122   : > { %v1691_v22 = vpop.eup %1690  ;;  %v670_v23 = vadd.f32 1.0, %v1689_v17  ;;  %v724_v24 = vpack.c.bf16 %v711_v16, %v710_v15 }
 0x123   : > { %v1693_v25 = vpop.eup %1692  ;;  %1702 = vrcp.f32 %v672_v19  ;;  %v673_v26 = vadd.f32 1.0, %v1691_v22  ;;  %889 = vmatmul.mubr.bf16.vlgmr.msra.gmra.mrb[0].mxu1 %v725_v21 }
 0x124   : > { %1704 = vrcp.f32 %v670_v23  ;;  %v671_v27 = vadd.f32 1.0, %v1693_v25  ;;  %869 = vmatmul.mubr.bf16.gmra.mrb[20].mxu0 %v723_v3  ;;  %898 = vmatprep.mubr.bf16.mxu1 %v1879_v28 }
 0x125   : > { %v1695_v52 = vpop.eup %1694  ;;  %1706 = vrcp.f32 %v673_v26  ;;  %878 = vmatprep.mubr.bf16.mxu0 %v1879_v28 }
 0x126   : > { %v1697_v55 = vpop.eup %1696  ;;  %1708 = vrcp.f32 %v671_v27  ;;  %v716_v30 = vmul.f32 %v1695_v52, %v2093_v9 }
 0x127   : > { %v1699_v58 = vpop.eup %1698  ;;  %v714_v33 = vmul.f32 %v1697_v55, %v2097_v14 }
 0x128   : > { %v1701_v60 = vpop.eup %1700  ;;  %v717_v32 = vmul.f32 %v1699_v58, %v2102_v18 }
 0x129   : > { %v715_v34 = vmul.f32 %v1701_v60, %v2106_v20 }
 0x12a   : > { %v727_v35 = vpack.c.bf16 %v717_v32, %v716_v30 }
 0x12b   : > { %v726_v38 = vpack.c.bf16 %v715_v34, %v714_v33 }
 0x12c   : > { %879 = vmatmul.mubr.bf16.gmra.mrb[24].mxu0 %v724_v24 }
 0x12d   : > { %v1703_v40 = vpop.eup %1702  ;;  %899 = vmatmul.mubr.bf16.gmra.mrb[4].mxu1 %v726_v38 }
 0x12e   : > { %v1705_v41 = vpop.eup %1704  ;;  %908 = vmatprep.mubr.bf16.mxu1 %v1879_v28  ;;  %v720_v47 = vmul.f32 %v1703_v40, %v2113_v37  ;;  %v2156_v37 = vsub.s32 0, %v2153_v51 }
 0x12f   : > { %v1707_v43 = vpop.eup %1706  ;;  %v718_v18 = vmul.f32 %v1705_v41, %v2117_v45  ;;  %v939_v45 = vld [vmem:[%s2412_s5] sm:$0x3] }
 0x130   : > { %v1709_v46 = vpop.eup %1708  ;;  %v721_v9 = vmul.f32 %v1707_v43, %v2122_v49  ;;  %v2162_v49 = vsub.s32 1, %v2153_v51 }
 0x131   : > { %v719_v14 = vmul.f32 %v1709_v46, %v2126_v53  ;;  %v983_v53 = vld [vmem:[%s2413_s6] sm:$0x3] }
 0x132   : > { %v729_v48 = vpack.c.bf16 %v721_v9, %v720_v47  ;;  %v2171_v54 = vrot.slane %v939_v45, %v2162_v49  ;;  %v2174_v56 = vrot.slane %v983_v53, %v2156_v37  ;;  %v2177_v29 = vrot.slane %v983_v53, %v2162_v49 }
 0x133   : > { %v728_v20 = vpack.c.bf16 %v719_v14, %v718_v18 }
 0x135   : > { %909 = vmatmul.mubr.bf16.gmra.mrb[8].mxu1 %v727_v35 }
 0x136   : > { %918 = vmatprep.mubr.bf16.mxu1 %v1879_v28 }
 0x13d   : > { %919 = vmatmul.mubr.bf16.gmra.mrb[12].mxu1 %v728_v20 }
 0x13e   : > { %928 = vmatprep.mubr.bf16.mxu1 %v1879_v28  ;;  %v2168_v28 = vrot.slane %v939_v45, %v2156_v37 }
 0x145   : > { %929 = vmatmul.mubr.bf16.gmra.mrb[16].mxu1 %v729_v48 }
 0x1ef   : > { %v860_v57 = vpop.f32.mrb[16].mxu0 }
 0x1f0   : > { %v951_v59 = vmul.f32 %v2168_v28, %v860_v57  ;;  %v862_v61 = vpop.f32.mrb[17].mxu0 }
 0x1f1   : > { %v952_v62 = vmul.f32 %v2171_v54, %v862_v61  ;;  %v864_v63 = vpop.f32.mrb[18].mxu0 }
 0x1f2   : > { %v2182_v0 = vadd.f32 %v2174_v56, %v951_v59  ;;  %v953_v31 = vmul.f32 %v2168_v28, %v864_v63  ;;  %v866_v1 = vpop.f32.mrb[19].mxu0 }
 0x1f3   : > { %v2186_v2 = vadd.f32 %v2177_v29, %v952_v62  ;;  %v954_v3 = vmul.f32 %v2171_v54, %v866_v1 }
 0x1f4   : > { %v1486_v4 = vmul.f32 -1.442695, %v2182_v0  ;;  %v2191_v5 = vadd.f32 %v2174_v56, %v953_v31 }
 0x1f5   : > { %v1487_v6 = vmul.f32 -1.442695, %v2186_v2  ;;  %v2195_v7 = vadd.f32 %v2177_v29, %v954_v3 }
 0x1f6   : > { %1710 = vpow2.f32 %v1486_v4  ;;  %v1488_v8 = vmul.f32 -1.442695, %v2191_v5  ;;  %v890_v36 = vpop.f32.mrb[0].mxu1 }
 0x1f7   : > { %1712 = vpow2.f32 %v1487_v6  ;;  %v1489_v42 = vmul.f32 -1.442695, %v2195_v7  ;;  %v963_v10 = vmul.f32 %v2168_v28, %v890_v36  ;;  %v870_v39 = vpop.f32.mrb[20].mxu0  ;;  %v892_v44 = vpop.f32.mrb[1].mxu1 }
 0x1f8   : > { %1714 = vpow2.f32 %v1488_v8  ;;  %v955_v11 = vmul.f32 %v2168_v28, %v870_v39  ;;  %v964_v12 = vmul.f32 %v2171_v54, %v892_v44  ;;  %v872_v13 = vpop.f32.mrb[21].mxu0  ;;  %v894_v15 = vpop.f32.mrb[2].mxu1 }
 0x1f9   : > { %1716 = vpow2.f32 %v1489_v42  ;;  %v2203_v16 = vadd.f32 %v2174_v56, %v963_v10  ;;  %v956_v17 = vmul.f32 %v2171_v54, %v872_v13  ;;  %v965_v19 = vmul.f32 %v2168_v28, %v894_v15  ;;  %v874_v21 = vpop.f32.mrb[22].mxu0  ;;  %v896_v22 = vpop.f32.mrb[3].mxu1 }
 0x1fa   : > { %v2208_v23 = vadd.f32 %v2174_v56, %v955_v11  ;;  %v2211_v24 = vadd.f32 %v2177_v29, %v964_v12  ;;  %v957_v25 = vmul.f32 %v2168_v28, %v874_v21  ;;  %v876_v26 = vpop.f32.mrb[23].mxu0  ;;  %v966_v58 = vmul.f32 %v2171_v54, %v896_v22 }
 0x1fb   : > { %v1498_v27 = vmul.f32 -1.442695, %v2203_v16  ;;  %v2216_v52 = vadd.f32 %v2177_v29, %v956_v17  ;;  %v2219_v55 = vadd.f32 %v2174_v56, %v965_v19  ;;  %v958_v33 = vmul.f32 %v2171_v54, %v876_v26 }
 0x1fc   : > { %v1490_v60 = vmul.f32 -1.442695, %v2208_v23  ;;  %v1499_v30 = vmul.f32 -1.442695, %v2211_v24  ;;  %v2225_v32 = vadd.f32 %v2174_v56, %v957_v25  ;;  %v2232_v40 = vadd.f32 %v2177_v29, %v966_v58 }
 0x1fd   : > { %1718 = vpow2.f32 %v1498_v27  ;;  %v1491_v34 = vmul.f32 -1.442695, %v2216_v52  ;;  %v1500_v35 = vmul.f32 -1.442695, %v2219_v55  ;;  %v2235_v46 = vadd.f32 %v2177_v29, %v958_v33 }
 0x1fe   : > { %1720 = vpow2.f32 %v1490_v60  ;;  %v1492_v38 = vmul.f32 -1.442695, %v2225_v32  ;;  %v1501_v1 = vmul.f32 -1.442695, %v2232_v40 }
 0x1ff   : > { %1722 = vpow2.f32 %v1499_v30  ;;  %v880_v41 = vpop.f32.mrb[24].mxu0  ;;  %v1493_v6 = vmul.f32 -1.442695, %v2235_v46 }
 0x200   : > { %v1711_v43 = vpop.eup %1710  ;;  %1724 = vpow2.f32 %v1491_v34  ;;  %v959_v47 = vmul.f32 %v2168_v28, %v880_v41  ;;  %v900_v9 = vpop.f32.mrb[4].mxu1 }
 0x201   : > { %v882_v18 = vpop.f32.mrb[25].mxu0  ;;  %v1713_v14 = vpop.eup %1712  ;;  %v1123_v48 = vadd.f32 1.0, %v1711_v43  ;;  %1726 = vpow2.f32 %v1500_v35  ;;  %v967_v8 = vmul.f32 %v2168_v28, %v900_v9 }
 0x202   : > { %v902_v20 = vpop.f32.mrb[5].mxu1  ;;  %v884_v45 = vpop.f32.mrb[26].mxu0  ;;  %v1124_v57 = vadd.f32 1.0, %v1713_v14  ;;  %1728 = vpow2.f32 %v1492_v38  ;;  %v2239_v59 = vadd.f32 %v2174_v56, %v959_v47  ;;  %v960_v42 = vmul.f32 %v2171_v54, %v882_v18 }
 0x203   : > { %v1715_v53 = vpop.eup %1714  ;;  %v904_v61 = vpop.f32.mrb[6].mxu1  ;;  %1730 = vrcp.f32 %v1123_v48  ;;  %v968_v10 = vmul.f32 %v2171_v54, %v902_v20  ;;  %v961_v44 = vmul.f32 %v2168_v28, %v884_v45  ;;  %v2249_v13 = vadd.f32 %v2174_v56, %v967_v8 }
 0x204   : > { %v886_v62 = vpop.f32.mrb[27].mxu0  ;;  %v1717_v63 = vpop.eup %1716  ;;  %v1125_v31 = vadd.f32 1.0, %v1715_v53  ;;  %1732 = vrcp.f32 %v1124_v57  ;;  %v1494_v36 = vmul.f32 -1.442695, %v2239_v59  ;;  %v2252_v21 = vadd.f32 %v2177_v29, %v960_v42 }
 0x205   : > { %v906_v3 = vpop.f32.mrb[7].mxu1  ;;  %v1126_v4 = vadd.f32 1.0, %v1717_v63  ;;  %v969_v22 = vmul.f32 %v2168_v28, %v904_v61  ;;  %v2256_v58 = vadd.f32 %v2177_v29, %v968_v10  ;;  %v962_v60 = vmul.f32 %v2171_v54, %v886_v62 }
 0x206   : > { %1734 = vrcp.f32 %v1125_v31  ;;  %v2260_v35 = vadd.f32 %v2174_v56, %v961_v44  ;;  %v970_v38 = vmul.f32 %v2171_v54, %v906_v3  ;;  %v1502_v9 = vmul.f32 -1.442695, %v2249_v13 }
 0x207   : > { %1736 = vrcp.f32 %v1126_v4  ;;  %v1719_v39 = vpop.eup %1718  ;;  %v1495_v48 = vmul.f32 -1.442695, %v2252_v21  ;;  %v2266_v20 = vadd.f32 %v2174_v56, %v969_v22  ;;  %v1503_v53 = vmul.f32 -1.442695, %v2256_v58 }
 0x208   : > { %1738 = vpow2.f32 %v1501_v1  ;;  %v1721_v11 = vpop.eup %1720  ;;  %v1135_v12 = vadd.f32 1.0, %v1719_v39  ;;  %v910_v15 = vpop.f32.mrb[8].mxu1  ;;  %v2270_v57 = vadd.f32 %v2177_v29, %v962_v60  ;;  %v1496_v63 = vmul.f32 -1.442695, %v2260_v35 }
 0x209   : > { %1740 = vpow2.f32 %v1493_v6  ;;  %v1723_v17 = vpop.eup %1722  ;;  %v1127_v19 = vadd.f32 1.0, %v1721_v11  ;;  %v912_v25 = vpop.f32.mrb[9].mxu1  ;;  %v971_v61 = vmul.f32 %v2168_v28, %v910_v15  ;;  %v2275_v31 = vadd.f32 %v2177_v29, %v970_v38 }
 0x20a   : > { %1742 = vpow2.f32 %v1494_v36  ;;  %v1725_v26 = vpop.eup %1724  ;;  %v1136_v27 = vadd.f32 1.0, %v1723_v17  ;;  %v914_v30 = vpop.f32.mrb[10].mxu1  ;;  %v972_v1 = vmul.f32 %v2171_v54, %v912_v25  ;;  %v1504_v44 = vmul.f32 -1.442695, %v2266_v20 }
 0x20b   : > { %1744 = vrcp.f32 %v1135_v12  ;;  %v1727_v33 = vpop.eup %1726  ;;  %v1128_v34 = vadd.f32 1.0, %v1725_v26  ;;  %v916_v41 = vpop.f32.mrb[11].mxu1  ;;  %v973_v8 = vmul.f32 %v2168_v28, %v914_v30  ;;  %v1497_v60 = vmul.f32 -1.442695, %v2270_v57 }
 0x20c   : > { %1746 = vrcp.f32 %v1127_v19  ;;  %v1729_v43 = vpop.eup %1728  ;;  %v1137_v47 = vadd.f32 1.0, %v1727_v33  ;;  %v974_v38 = vmul.f32 %v2171_v54, %v916_v41 }
 0x20d   : > { %1748 = vrcp.f32 %v1136_v27  ;;  %v1731_v18 = vpop.eup %1730  ;;  %v1129_v14 = vadd.f32 1.0, %v1729_v43  ;;  %v2294_v30 = vadd.f32 %v2174_v56, %v973_v8 }
 0x20e   : > { %1750 = vrcp.f32 %v1128_v34  ;;  %v1733_v45 = vpop.eup %1732  ;;  %v1219_v4 = vmul.f32 %v1731_v18, %v2182_v0  ;;  %v2285_v0 = vadd.f32 %v2174_v56, %v971_v61  ;;  %v1505_v34 = vmul.f32 -1.442695, %v2275_v31 }
 0x20f   : > { %1752 = vrcp.f32 %v1137_v47  ;;  %v1220_v10 = vmul.f32 %v1733_v45, %v2186_v2  ;;  %v2288_v2 = vadd.f32 %v2177_v29, %v972_v1  ;;  %v2310_v1 = vadd.f32 %v2177_v29, %v974_v38 }
 0x210   : > { %v1735_v62 = vpop.eup %1734  ;;  %1754 = vrcp.f32 %v1129_v14  ;;  %v920_v36 = vpop.f32.mrb[12].mxu1 }
 0x211   : > { %v1737_v3 = vpop.eup %1736  ;;  %v1221_v6 = vmul.f32 %v1735_v62, %v2191_v5  ;;  %1756 = vpow2.f32 %v1502_v9  ;;  %v922_v11 = vpop.f32.mrb[13].mxu1  ;;  %v1506_v9 = vmul.f32 -1.442695, %v2285_v0  ;;  %v975_v18 = vmul.f32 %v2168_v28, %v920_v36 }
 0x212   : > { %v1739_v42 = vpop.eup %1738  ;;  %v1222_v39 = vmul.f32 %v1737_v3, %v2195_v7  ;;  %1758 = vpow2.f32 %v1495_v48  ;;  %v924_v5 = vpop.f32.mrb[14].mxu1  ;;  %v1507_v48 = vmul.f32 -1.442695, %v2288_v2  ;;  %v976_v45 = vmul.f32 %v2171_v54, %v922_v11 }
 0x213   : > { %v1741_v12 = vpop.eup %1740  ;;  %v1252_v15 = vadd.f32 %v1221_v6, %v1219_v4  ;;  %v1138_v17 = vadd.f32 1.0, %v1739_v42  ;;  %1760 = vpow2.f32 %v1503_v53  ;;  %v926_v7 = vpop.f32.mrb[15].mxu1  ;;  %v1508_v62 = vmul.f32 -1.442695, %v2294_v30 }
 0x214   : > { %v1743_v19 = vpop.eup %1742  ;;  %v1273_v22 = vadd.f32 %v1222_v39, %v1220_v10  ;;  %v1130_v25 = vadd.f32 1.0, %v1741_v12  ;;  %1762 = vpow2.f32 %v1496_v63  ;;  %v2314_v36 = vadd.f32 %v2174_v56, %v975_v18 }
 0x215   : > { %v2290_v26 = vpop.eup %1744  ;;  %1764 = vrcp.f32 %v1138_v17  ;;  %v1131_v27 = vadd.f32 1.0, %v1743_v19  ;;  %v2317_v39 = vadd.f32 %v2177_v29, %v976_v45  ;;  %v978_v38 = vmul.f32 %v2171_v54, %v926_v7 }
 0x216   : > { %v1747_v33 = vpop.eup %1746  ;;  %1766 = vrcp.f32 %v1130_v25 }
 0x217   : > { %v2298_v43 = vpop.eup %1748  ;;  %v1223_v47 = vmul.f32 %v1747_v33, %v2208_v23  ;;  %1768 = vrcp.f32 %v1131_v27  ;;  %v1510_v27 = vmul.f32 -1.442695, %v2314_v36 }
 0x218   : > { %v1751_v14 = vpop.eup %1750  ;;  %1770 = vpow2.f32 %v1504_v44  ;;  %v930_v23 = vpop.f32.mrb[16].mxu1 }
 0x219   : > { %v2305_v53 = vpop.eup %1752  ;;  %v1253_v61 = vadd.f32 %v1252_v15, %v1223_v47  ;;  %v1224_v41 = vmul.f32 %v1751_v14, %v2216_v52  ;;  %1772 = vpow2.f32 %v1497_v60  ;;  %v932_v3 = vpop.f32.mrb[17].mxu1  ;;  %v977_v60 = vmul.f32 %v2168_v28, %v924_v5 }
 0x21a   : > { %v1755_v63 = vpop.eup %1754  ;;  %1774 = vpow2.f32 %v1505_v34  ;;  %v934_v42 = vpop.f32.mrb[18].mxu1  ;;  %v1511_v34 = vmul.f32 -1.442695, %v2317_v39  ;;  %v979_v18 = vmul.f32 %v2168_v28, %v930_v23  ;;  %v980_v45 = vmul.f32 %v2171_v54, %v932_v3 }
 0x21b   : > { %v1757_v4 = vpop.eup %1756  ;;  %v1274_v6 = vadd.f32 %v1273_v22, %v1224_v41  ;;  %v1225_v8 = vmul.f32 %v1755_v63, %v2225_v32  ;;  %1776 = vpow2.f32 %v1506_v9  ;;  %v936_v44 = vpop.f32.mrb[19].mxu1  ;;  %v1509_v32 = vmul.f32 -1.442695, %v2310_v1 }
 0x21c   : > { %v1759_v52 = vpop.eup %1758  ;;  %v1139_v10 = vadd.f32 1.0, %v1757_v4  ;;  %1778 = vpow2.f32 %v1507_v48 }
 0x21d   : > { %v1761_v11 = vpop.eup %1760  ;;  %v1254_v12 = vadd.f32 %v1253_v61, %v1225_v8  ;;  %v1132_v15 = vadd.f32 1.0, %v1759_v52  ;;  %1780 = vpow2.f32 %v1508_v62  ;;  %v2331_v62 = vadd.f32 %v2174_v56, %v977_v60 }
 0x21e   : > { %v1763_v17 = vpop.eup %1762  ;;  %1782 = vrcp.f32 %v1139_v10  ;;  %v1140_v19 = vadd.f32 1.0, %v1761_v11  ;;  %v2337_v8 = vadd.f32 %v2174_v56, %v979_v18  ;;  %v2340_v52 = vadd.f32 %v2177_v29, %v980_v45 }
 0x21f   : > { %v2320_v22 = vpop.eup %1764  ;;  %1784 = vrcp.f32 %v1132_v15  ;;  %v1133_v25 = vadd.f32 1.0, %v1763_v17  ;;  %v981_v10 = vmul.f32 %v2168_v28, %v934_v42  ;;  %v1512_v15 = vmul.f32 -1.442695, %v2331_v62 }
 0x220   : > { %v1767_v33 = vpop.eup %1766  ;;  %1786 = vrcp.f32 %v1140_v19  ;;  %v982_v17 = vmul.f32 %v2171_v54, %v936_v44  ;;  %v1514_v60 = vmul.f32 -1.442695, %v2337_v8  ;;  %v1515_v28 = vmul.f32 -1.442695, %v2340_v52 }
 0x221   : > { %v1769_v47 = vpop.eup %1768  ;;  %v1226_v9 = vmul.f32 %v1767_v33, %v2235_v46  ;;  %1788 = vrcp.f32 %v1133_v25  ;;  %v2334_v46 = vadd.f32 %v2177_v29, %v978_v38  ;;  %v2350_v42 = vadd.f32 %v2174_v56, %v981_v10 }
 0x222   : > { %v1771_v14 = vpop.eup %1770  ;;  %v1227_v48 = vmul.f32 %v1769_v47, %v2239_v59  ;;  %1790 = vpow2.f32 %v1509_v32  ;;  %v2353_v54 = vadd.f32 %v2177_v29, %v982_v17 }
 0x223   : > { %v1773_v61 = vpop.eup %1772  ;;  %v1275_v5 = vadd.f32 %v1274_v6, %v1226_v9  ;;  %v1141_v41 = vadd.f32 1.0, %v1771_v14  ;;  %1792 = vpow2.f32 %v1510_v27  ;;  %v1513_v25 = vmul.f32 -1.442695, %v2334_v46 }
 0x224   : > { %v1775_v7 = vpop.eup %1774  ;;  %v1255_v63 = vadd.f32 %v1254_v12, %v1227_v48  ;;  %v1134_v4 = vadd.f32 1.0, %v1773_v61  ;;  %1794 = vpow2.f32 %v1511_v34  ;;  %v1516_v61 = vmul.f32 -1.442695, %v2350_v42 }
 0x225   : > { %v1777_v23 = vpop.eup %1776  ;;  %1796 = vrcp.f32 %v1141_v41  ;;  %v1142_v59 = vadd.f32 1.0, %v1775_v7 }
 0x226   : > { %v1779_v3 = vpop.eup %1778  ;;  %1798 = vrcp.f32 %v1134_v4  ;;  %v1143_v6 = vadd.f32 1.0, %v1777_v23 }
 0x227   : > { %v1781_v11 = vpop.eup %1780  ;;  %1800 = vrcp.f32 %v1142_v59  ;;  %v1144_v12 = vadd.f32 1.0, %v1779_v3 }
 0x228   : > { %v1783_v19 = vpop.eup %1782  ;;  %1802 = vrcp.f32 %v1143_v6  ;;  %v1145_v32 = vadd.f32 1.0, %v1781_v11  ;;  %v1232_v6 = vmul.f32 %v2298_v43, %v2211_v24 }
 0x229   : > { %v1785_v27 = vpop.eup %1784  ;;  %1804 = vrcp.f32 %v1144_v12  ;;  %v1235_v23 = vmul.f32 %v1783_v19, %v2249_v13 }
 0x22a   : > { %v1787_v33 = vpop.eup %1786  ;;  %v1228_v34 = vmul.f32 %v1785_v27, %v2252_v21  ;;  %1806 = vrcp.f32 %v1145_v32  ;;  %v1231_v21 = vmul.f32 %v2290_v26, %v2203_v16 }
 0x22b   : > { %v1789_v38 = vpop.eup %1788  ;;  %1808 = vpow2.f32 %v1512_v15  ;;  %v1236_v27 = vmul.f32 %v1787_v33, %v2256_v58 }
 0x22c   : > { %v1791_v44 = vpop.eup %1790  ;;  %v1276_v47 = vadd.f32 %v1275_v5, %v1228_v34  ;;  %v1229_v9 = vmul.f32 %v1789_v38, %v2260_v35  ;;  %1810 = vpow2.f32 %v1513_v25  ;;  %v1517_v5 = vmul.f32 -1.442695, %v2353_v54 }
 0x22d   : > { %v1793_v18 = vpop.eup %1792  ;;  %v1146_v14 = vadd.f32 1.0, %v1791_v44  ;;  %1812 = vpow2.f32 %v1514_v60  ;;  %v1233_v35 = vmul.f32 %v2305_v53, %v2219_v55 }
 0x22e   : > { %v1795_v48 = vpop.eup %1794  ;;  %v1256_v45 = vadd.f32 %v1255_v63, %v1229_v9  ;;  %v1147_v56 = vadd.f32 1.0, %v1793_v18  ;;  %1814 = vpow2.f32 %v1515_v28 }
 0x22f   : > { %v1797_v41 = vpop.eup %1796  ;;  %1816 = vrcp.f32 %v1146_v14  ;;  %v1148_v29 = vadd.f32 1.0, %v1795_v48 }
 0x230   : > { %v1799_v7 = vpop.eup %1798  ;;  %v1257_v4 = vadd.f32 %v1256_v45, %v1231_v21  ;;  %1818 = vrcp.f32 %v1147_v56  ;;  %v1237_v55 = vmul.f32 %v1797_v41, %v2266_v20 }
 0x231   : > { %v1801_v16 = vpop.eup %1800  ;;  %v1230_v26 = vmul.f32 %v1799_v7, %v2270_v57  ;;  %1820 = vrcp.f32 %v1148_v29  ;;  %v1234_v57 = vmul.f32 %v2320_v22, %v2232_v40 }
 0x232   : > { %v1803_v63 = vpop.eup %1802  ;;  %v1258_v59 = vadd.f32 %v1257_v4, %v1233_v35  ;;  %1822 = vpow2.f32 %v1516_v61  ;;  %v1238_v40 = vmul.f32 %v1801_v16, %v2275_v31 }
 0x233   : > { %v1805_v3 = vpop.eup %1804  ;;  %v1277_v10 = vadd.f32 %v1276_v47, %v1230_v26  ;;  %1824 = vpow2.f32 %v1517_v5  ;;  %v1239_v13 = vmul.f32 %v1803_v63, %v2285_v0 }
 0x234   : > { %v1807_v11 = vpop.eup %1806  ;;  %v1259_v53 = vadd.f32 %v1258_v59, %v1235_v23  ;;  %v1240_v58 = vmul.f32 %v1805_v3, %v2288_v2 }
 0x235   : > { %v1809_v12 = vpop.eup %1808  ;;  %v1278_v15 = vadd.f32 %v1277_v10, %v1232_v6  ;;  %v1241_v20 = vmul.f32 %v1807_v11, %v2294_v30 }
 0x236   : > { %v1811_v17 = vpop.eup %1810  ;;  %v1260_v32 = vadd.f32 %v1259_v53, %v1237_v55  ;;  %v1149_v19 = vadd.f32 1.0, %v1809_v12 }
 0x237   : > { %v1813_v25 = vpop.eup %1812  ;;  %v1279_v24 = vadd.f32 %v1278_v15, %v1234_v57  ;;  %v1150_v43 = vadd.f32 1.0, %v1811_v17  ;;  %v1880_v57 = vmov 1966171168  }
 0x238   : > { %v1815_v60 = vpop.eup %1814  ;;  %v1261_v34 = vadd.f32 %v1260_v32, %v1239_v13  ;;  %1826 = vrcp.f32 %v1149_v19  ;;  %v1151_v28 = vadd.f32 1.0, %v1813_v25  ;;  %v1298_v15 = vunpack.c.l.s4 %v1880_v57 }
 0x239   : > { %v1817_v38 = vpop.eup %1816  ;;  %v1280_v22 = vadd.f32 %v1279_v24, %v1236_v27  ;;  %1828 = vrcp.f32 %v1150_v43  ;;  %v1152_v44 = vadd.f32 1.0, %v1815_v60  ;;  %v1251_v60 = vld [vmem:[#allocation2] sm:$0x3] }
 0x23a   : > { %v1819_v47 = vpop.eup %1818  ;;  %v1262_v0 = vadd.f32 %v1261_v34, %v1241_v20  ;;  %1830 = vrcp.f32 %v1151_v28  ;;  %v1242_v30 = vmul.f32 %v1817_v38, %v2310_v1  ;;  %v1299_v13 = vunpack.c.0.s8 %v1298_v15  ;;  %v1323_v38 = vld [vmem:[%s2414_s7] sm:$0x3] (!%p1518_p8) }
 0x23b   : > { %v1821_v9 = vpop.eup %1820  ;;  %v1281_v18 = vadd.f32 %v1280_v22, %v1238_v40  ;;  %v1243_v33 = vmul.f32 %v1819_v47, %v2314_v36  ;;  %1832 = vrcp.f32 %v1152_v44 }
 0x23c   : > { %v1823_v21 = vpop.eup %1822  ;;  %v1244_v31 = vmul.f32 %v1821_v9, %v2317_v39 }
 0x23d   : > { %v1825_v14 = vpop.eup %1824  ;;  %v1282_v48 = vadd.f32 %v1281_v18, %v1240_v58  ;;  %v1263_v45 = vadd.f32 %v1262_v0, %v1243_v33  ;;  %v1153_v56 = vadd.f32 1.0, %v1823_v21 }
 0x23e   : > { %v1154_v61 = vadd.f32 1.0, %v1825_v14 }
 0x23f   : > { %v1283_v41 = vadd.f32 %v1282_v48, %v1242_v30  ;;  %1834 = vrcp.f32 %v1153_v56 }
 0x240   : > { %1836 = vrcp.f32 %v1154_v61 }
 0x241   : > { %v1284_v29 = vadd.f32 %v1283_v41, %v1244_v31 }
 0x242   : > { %v1827_v5 = vpop.eup %1826 }
 0x243   : > { %v1829_v7 = vpop.eup %1828  ;;  %v1245_v2 = vmul.f32 %v1827_v5, %v2331_v62 }
 0x244   : > { %v1831_v36 = vpop.eup %1830  ;;  %v1246_v35 = vmul.f32 %v1829_v7, %v2334_v46 }
 0x245   : > { %v1833_v4 = vpop.eup %1832  ;;  %v1264_v1 = vadd.f32 %v1263_v45, %v1245_v2  ;;  %v1247_v16 = vmul.f32 %v1831_v36, %v2337_v8 }
 0x246   : > { %v1285_v26 = vadd.f32 %v1284_v29, %v1246_v35  ;;  %v1248_v39 = vmul.f32 %v1833_v4, %v2340_v52 }
 0x247   : > { %v1265_v63 = vadd.f32 %v1264_v1, %v1247_v16 }
 0x248   : > { %v1286_v23 = vadd.f32 %v1285_v26, %v1248_v39 }
 0x249   : > { %v1835_v59 = vpop.eup %1834 }
 0x24a   : > { %v1837_v3 = vpop.eup %1836  ;;  %v1249_v6 = vmul.f32 %v1835_v59, %v2350_v42  ;;  %v1302_v42 = vsub.s32 %v1299_v13, %v2153_v51 }
 0x24b   : > { %v1250_v10 = vmul.f32 %v1837_v3, %v2353_v54 }
 0x24c   : > { %v1266_v11 = vadd.f32 %v1265_v63, %v1249_v6 }
 0x24d   : > { %v1287_v62 = vadd.f32 %v1286_v23, %v1250_v10 }
 0x24e   : > { %v1267_v55 = vrot.slane %v1266_v11, 4 }
 0x24f   : > { %v1288_v53 = vrot.slane %v1287_v62, 4 }
 0x250   : > { %v1268_v46 = vadd.f32 %v1267_v55, %v1266_v11 }
 0x251   : > { %v1289_v12 = vadd.f32 %v1288_v53, %v1287_v62 }
 0x252   : > { %v1269_v8 = vrot.slane %v1268_v46, 2 }
 0x253   : > { %v1290_v17 = vrot.slane %v1289_v12, 2 }
 0x254   : > { %v1270_v32 = vadd.f32 %v1269_v8, %v1268_v46 }
 0x255   : > { %v1291_v52 = vadd.f32 %v1290_v17, %v1289_v12 }
 0x256   : > { %v1271_v19 = vrot.slane %v1270_v32, 1 }
 0x257   : > { %v1292_v25 = vrot.slane %v1291_v52, 1 }
 0x258   : > { %v1272_v27 = vadd.f32 %v1271_v19, %v1270_v32 }
 0x259   : > { %v1293_v24 = vadd.f32 %v1292_v25, %v1291_v52 }
 0x25b   : > { %v1296_v54 = vcombine.low %v1272_v27, %v1293_v24 }
 0x25d   : > { %v1303_v43 = vrot.slane %v1296_v54, %v1302_v42  ;;  %1321 = sbr.rel (%p1518_p8) target bundleno = 836 (0x344), region = 64 }
 0x25f   : > { %v1310_v34 = vrot.slane %v1303_v43, %v1302_v42 }
 0x261   : > { %v1312_v20 = vadd.f32 %v1310_v34, %v1251_v60 }
 0x263   : > { %1317 = vst.msk [vmem:[#allocation2] sm:$0x3] %vm1315_vm2, %v1312_v20 }
 0x26a   : > { %v1322_v28 = vld [vmem:[#allocation2] sm:$0x3] }
 0x26b   : > { %v1324_v40 = vmul.f32 %v1323_v38, %v1322_v28 }
 0x26d   : > { %v1329_v51 = vrot.slane %v1324_v40, %v2156_v37  ;;  %v1333_v22 = vrot.slane %v1324_v40, %v2162_v49 }
 0x26f   : > { %v1337_v44 = vsel %vm1336_vm3, %v1329_v51, 0.0  ;;  %v1338_v47 = vsel %vm1336_vm3, %v1333_v22, 0.0 }
 0x270   : > { %v1339_v50 = vadd.f32 %v1338_v47, %v1337_v44 }
 0x272   : > { %1340 = vadd.xlane.f32.xlu0 %v1339_v50 }
 0x2ff   : > { %v1341_v0 = vpop.xlane.xlu0 %1340 }
 0x300   : > { %v1342_v9 = vrot.slane %v1341_v0, 4 }
 0x302   : > { %v1343_v18 = vadd.f32 %v1342_v9, %v1341_v0 }
 0x304   : > { %v1344_v58 = vrot.slane %v1343_v18, 2 }
 0x306   : > { %v1345_v33 = vadd.f32 %v1344_v58, %v1343_v18 }
 0x308   : > { %v1346_v21 = vrot.slane %v1345_v33, 1 }
 0x30a   : > { %v1347_v30 = vadd.f32 %v1346_v21, %v1345_v33 }
 0x30c   : > { %1567 = vpush %v1347_v30 }
 0x33d   : > { %s1568_s29 = spop %1567 }
 0x33e   : > { %s1349_s30 = smul.f32 0.00390625, %s1568_s29 }
 0x340   : > { %s1351_s10 = sadd.f32 %s1350_s11, %s1349_s30 }
 0x342   : > { %v1352_v37 = vstv %s1351_s10 }
 0x343   : > { %1353 = vst [vmem:[%s1970_s23] sm:$0xff] %v1352_v37 }
 0x344 PF: > { %s20_s15 = sadd.s32 1, %s1876_s15   ;;  %s2417_s11 = smov %s1868_s13 }
 0x345   : > { %p17_p9 = scmp.ge.s32.totalorder %s20_s15, 6   ;;  %s2418_s12 = smov %s1872_s14 }
 0x346   : > { %s2419_s13 = smov %s2422_s8  ;;  %s2420_s14 = smov %s2426_s16 }
 0x347   :  { %19 = sbr.rel (!%p17_p9) target bundleno = 3 (0x3), region = 94 }

</bundles_post_ra>
